<compile_context>
chip_gen: v5e
topology: v5e:2x2
jax: 0.10.0
libtpu: 0.0.40
codegen_flags: <defaults>
</compile_context>

<pallas_src>
import math

import jax
import jax.numpy as jnp
from jax import lax
from jax.experimental import pallas as pl
from jax.experimental.pallas import tpu as pltpu


# Contract the last dim of both operands (A @ B^T fed straight to the MXU).
_NT = (((1,), (1,)), ((), ()))


def mino_kernel(fp_ref, qpos_ref,
                w_in_ref, b_in_ref, w_q_ref, b_q_ref,
                w_kv_ref, w_o_ref, b_o_ref, w_kv2_ref,
                w_out_ref, b_out_ref,
                pred_ref):
    f32 = jnp.float32
    bf16 = jnp.bfloat16
    H = w_o_ref.shape[0]
    scale = 1.0 / math.sqrt(H)

    fp = fp_ref[0]            # (S, C+D)  bf16, channels-last [feat | pos]
    qpos = qpos_ref[0]        # (Lq, D)   bf16, channels-last query positions

    def softmax_rows(s):
        # f32 statistics; EUP approximate reciprocal instead of a VPU divide.
        p = jnp.exp(s - jnp.max(s, axis=-1, keepdims=True))
        return p * pl.reciprocal(jnp.sum(p, axis=-1, keepdims=True), approx=True)

    # ----------------- Encoder -----------------
    # Single fused MXU pass over the tiny channel dims:
    #   [z | val_skip | q2_pre] = [feat|pos] @ [[W_f, W_val, 0], [W_p, 0, W_q2]] + [b_z, 0, b_q2]
    enc = jnp.dot(fp, w_in_ref[...], preferred_element_type=f32) + b_in_ref[...]   # (S, 3H)
    z = enc[:, :H]                        # (S, H)  encoder embedding
    val_skip = enc[:, H:2 * H]            # (S, H)  decoder value skip (feat @ W_val)
    q2 = enc[:, 2 * H:] * scale           # (S, H)  decoder query, 1/sqrt(H) folded in

    q = (jnp.dot(qpos, w_q_ref[...], preferred_element_type=f32)
         + b_q_ref[...]) * scale                                                   # (Lq, H)

    kv = jnp.dot(z.astype(bf16), w_kv_ref[...], preferred_element_type=f32)        # (S, 2H)
    k = kv[:, :H]
    v = kv[:, H:]

    s = lax.dot_general(q.astype(bf16), k.astype(bf16), _NT,
                        preferred_element_type=f32)                                # (Lq, S)
    attn = softmax_rows(s)
    ctx = jnp.dot(attn.astype(bf16), v.astype(bf16), preferred_element_type=f32)   # (Lq, H)
    latent = jnp.tanh(jnp.dot(ctx.astype(bf16), w_o_ref[...],
                              preferred_element_type=f32) + b_o_ref[...])          # (Lq, H)

    # ----------------- Decoder -----------------
    # output_pos == input_pos.permute(0,2,1) and output_val == input_feat.permute(0,2,1),
    # so q2 / val_skip reuse the fused encoder input projection above.
    kv2 = jnp.dot(latent.astype(bf16), w_kv2_ref[...], preferred_element_type=f32)  # (Lq, 2H)
    k2 = kv2[:, :H]
    v2 = kv2[:, H:]

    s2 = lax.dot_general(q2.astype(bf16), k2.astype(bf16), _NT,
                         preferred_element_type=f32)                                # (S, Lq)
    attn2 = softmax_rows(s2)
    ctx2 = jnp.dot(attn2.astype(bf16), v2.astype(bf16), preferred_element_type=f32)  # (S, H)

    h = ctx2 + val_skip                                                              # (S, H) f32
    pred = jnp.dot(h.astype(bf16), w_out_ref[...],
                   preferred_element_type=f32) + b_out_ref[...]                      # (S, Cp)
    pred_ref[0] = pred


def _pack_weights(params, n_chan, x_dim, hidden, c_pad):
    """Pack the 16 MINO parameters into 10 slabs (fused projections, lane-padded output)."""
    H = hidden
    bf16 = jnp.bfloat16
    f32 = jnp.float32
    zeros_c = jnp.zeros((n_chan, H), f32)
    zeros_d = jnp.zeros((x_dim, H), f32)
    w_in = jnp.concatenate([
        jnp.concatenate([params["W_f"], params["W_val"], zeros_c], axis=1),
        jnp.concatenate([params["W_p"], zeros_d, params["W_q2"]], axis=1),
    ], axis=0).astype(bf16)                                                          # (C+D, 3H)
    b_in = jnp.concatenate([params["b_z"], jnp.zeros((1, H), f32), params["b_q2"]],
                           axis=1)                                                   # (1, 3H)
    w_kv = jnp.concatenate([params["W_k"], params["W_v"]], axis=1).astype(bf16)      # (H, 2H)
    w_kv2 = jnp.concatenate([params["W_k2"], params["W_v2"]], axis=1).astype(bf16)   # (H, 2H)
    w_out = jnp.pad(params["W_out"], ((0, 0), (0, c_pad - n_chan))).astype(bf16)     # (H, Cp)
    b_out = jnp.pad(params["b_out"], ((0, 0), (0, c_pad - n_chan)))                  # (1, Cp)
    return [w_in, b_in,
            params["W_q"].astype(bf16), params["b_q"],
            w_kv, params["W_o"].astype(bf16), params["b_o"], w_kv2,
            w_out, b_out]


def mino_forward(input_feat, input_pos, query_pos, params):
    """input_feat: (B,C,S), input_pos: (B,D,S), query_pos: (B,D,Lq) -> pred: (B,S,C)."""
    B, C, S = input_feat.shape
    D = input_pos.shape[1]
    Lq = query_pos.shape[2]
    H = params["W_o"].shape[0]
    Cp = max(128, -(-C // 128) * 128)      # lane-dense output slab; sliced below

    # Channels-last glue (what MINO.forward's einops.rearrange does).  feat and pos are
    # concatenated channel-first first so only two permutes remain and the kernel consumes
    # a single fused (S, C+D) slab in bf16.
    fp = jnp.transpose(jnp.concatenate([input_feat, input_pos], axis=1),
                       (0, 2, 1)).astype(jnp.bfloat16)                               # (B, S, C+D)
    qpos = jnp.transpose(query_pos, (0, 2, 1)).astype(jnp.bfloat16)                  # (B, Lq, D)

    weights = _pack_weights(params, C, D, H, Cp)

    def batch3(shape):
        return pl.BlockSpec(shape, lambda b: (b, 0, 0))

    def whole2(shape):                      # constant index_map: weights resident in VMEM
        return pl.BlockSpec(shape, lambda b: (0, 0))

    out = pl.pallas_call(
        mino_kernel,
        out_shape=jax.ShapeDtypeStruct((B, S, Cp), jnp.float32),
        grid_spec=pltpu.PrefetchScalarGridSpec(
            num_scalar_prefetch=0,
            grid=(B,),                      # one batch element per grid step; B>=2 keeps both
                                            # v7x TensorCores busy via "parallel".
            in_specs=[batch3((1, S, C + D)), batch3((1, Lq, D))]
                     + [whole2(w.shape) for w in weights],
            out_specs=batch3((1, S, Cp)),
        ),
        compiler_params=pltpu.CompilerParams(dimension_semantics=("parallel",)),
    )(fp, qpos, *weights)
    return out[:, :, :C]                    # drop output lane padding


def mino_reference(input_feat, input_pos, query_pos, params, matmul_dtype=jnp.float32):
    """Pure-JAX MINO forward (permute glue + encoder + decoder).

    matmul_dtype=float32 reproduces the exact module math; matmul_dtype=bfloat16 mirrors
    the kernel's mixed precision (bf16 MXU operands, f32 accumulation).
    """
    H = params["W_o"].shape[0]
    scale = 1.0 / math.sqrt(H)
    feat = jnp.transpose(input_feat, (0, 2, 1)).astype(jnp.float32)
    pos = jnp.transpose(input_pos, (0, 2, 1)).astype(jnp.float32)
    qpos = jnp.transpose(query_pos, (0, 2, 1)).astype(jnp.float32)

    def mm(eq, a, b):
        return jnp.einsum(eq, a.astype(matmul_dtype), b.astype(matmul_dtype),
                          preferred_element_type=jnp.float32)

    def softmax(s):
        p = jnp.exp(s - jnp.max(s, axis=-1, keepdims=True))
        return p / jnp.sum(p, axis=-1, keepdims=True)

    z = (mm("bsc,ch->bsh", feat, params["W_f"])
         + mm("bsd,dh->bsh", pos, params["W_p"]) + params["b_z"])
    q = (mm("bqd,dh->bqh", qpos, params["W_q"]) + params["b_q"]) * scale
    k = mm("bsh,hk->bsk", z, params["W_k"])
    v = mm("bsh,hk->bsk", z, params["W_v"])
    attn = softmax(mm("bqh,bkh->bqk", q, k))
    ctx = mm("bqk,bkh->bqh", attn, v)
    latent = jnp.tanh(mm("bqh,hj->bqj", ctx, params["W_o"]) + params["b_o"])

    q2 = (mm("bsd,dh->bsh", pos, params["W_q2"]) + params["b_q2"]) * scale
    k2 = mm("bqh,hj->bqj", latent, params["W_k2"])
    v2 = mm("bqh,hj->bqj", latent, params["W_v2"])
    attn2 = softmax(mm("bsh,bqh->bsq", q2, k2))
    ctx2 = mm("bsq,bqh->bsh", attn2, v2)
    h = ctx2 + mm("bsc,ch->bsh", feat, params["W_val"])
    return mm("bsh,hc->bsc", h, params["W_out"]) + params["b_out"]


def init_params(key, n_chan, x_dim, hidden):
    shapes = {
        "W_f": (n_chan, hidden), "W_p": (x_dim, hidden), "b_z": (1, hidden),
        "W_q": (x_dim, hidden), "b_q": (1, hidden),
        "W_k": (hidden, hidden), "W_v": (hidden, hidden),
        "W_o": (hidden, hidden), "b_o": (1, hidden),
        "W_q2": (x_dim, hidden), "b_q2": (1, hidden),
        "W_k2": (hidden, hidden), "W_v2": (hidden, hidden),
        "W_val": (n_chan, hidden),
        "W_out": (hidden, n_chan), "b_out": (1, n_chan),
    }
    params = {}
    keys = jax.random.split(key, len(shapes))
    for k, (name, shp) in zip(keys, sorted(shapes.items())):
        fan_in = shp[0] if name.startswith("W") else 1
        params[name] = (jax.random.normal(k, shp, jnp.float32)
                        / jnp.sqrt(jnp.float32(fan_in)))
    return params


if __name__ == "__main__":
    B, n_chan, x_dim, seq_len, query_len, hidden = 2, 4, 2, 16, 8, 32

    root = jax.random.PRNGKey(0)
    k_feat, k_pos, k_qpos, k_params = jax.random.split(root, 4)

    input_feat = jax.random.normal(k_feat, (B, n_chan, seq_len), jnp.float32)
    input_pos = jax.random.normal(k_pos, (B, x_dim, seq_len), jnp.float32)
    query_pos = jax.random.normal(k_qpos, (B, x_dim, query_len), jnp.float32)
    params = init_params(k_params, n_chan, x_dim, hidden)

    pred = mino_forward(input_feat, input_pos, query_pos, params)
    pred = jax.block_until_ready(pred)
    assert pred.shape == (B, seq_len, n_chan), pred.shape

    # Tight check against a reference that mirrors the kernel's mixed precision
    # (bf16 MXU operands, f32 accumulation, f32 softmax).
    ref_mixed = mino_reference(input_feat, input_pos, query_pos, params,
                               matmul_dtype=jnp.bfloat16)
    err_mixed = float(jnp.max(jnp.abs(pred - ref_mixed)))
    assert jnp.allclose(pred, ref_mixed, rtol=3e-2, atol=3e-2), err_mixed

    # Loose sanity check against the exact f32 module math (bounds bf16 drift).
    ref_f32 = mino_reference(input_feat, input_pos, query_pos, params)
    err_f32 = float(jnp.max(jnp.abs(pred - ref_f32)))
    assert jnp.allclose(pred, ref_f32, rtol=2e-1, atol=2e-1), err_f32

    print("KERNEL_OK")
</pallas_src>

<mosaic_0001>
module attributes {stable_mosaic.version = 11 : i64} {
  func.func @mino_kernel(%arg0: i32, %arg1: memref<1x16x6xbf16, #tpu.memory_space<vmem>>, %arg2: memref<1x8x2xbf16, #tpu.memory_space<vmem>>, %arg3: memref<6x96xbf16, #tpu.memory_space<vmem>>, %arg4: memref<1x96xf32, #tpu.memory_space<vmem>>, %arg5: memref<2x32xbf16, #tpu.memory_space<vmem>>, %arg6: memref<1x32xf32, #tpu.memory_space<vmem>>, %arg7: memref<32x64xbf16, #tpu.memory_space<vmem>>, %arg8: memref<32x32xbf16, #tpu.memory_space<vmem>>, %arg9: memref<1x32xf32, #tpu.memory_space<vmem>>, %arg10: memref<32x64xbf16, #tpu.memory_space<vmem>>, %arg11: memref<32x128xbf16, #tpu.memory_space<vmem>>, %arg12: memref<1x128xf32, #tpu.memory_space<vmem>>, %arg13: memref<1x16x128xf32, #tpu.memory_space<vmem>>) attributes {dimension_semantics = [#tpu.dimension_semantics<parallel>], iteration_bounds = array<i64: 2>, scalar_prefetch = 0 : i64, scratch_operands = 0 : i64, tpu.core_type = #tpu.core_type<tc>, window_params = [{transform_indices = @transform_0, window_bounds = array<i64: 1, 16, 6>}, {transform_indices = @transform_1, window_bounds = array<i64: 1, 8, 2>}, {pipeline_mode = #tpu.pipeline_mode<synchronous>, transform_indices = @transform_2, window_bounds = array<i64: 6, 96>}, {pipeline_mode = #tpu.pipeline_mode<synchronous>, transform_indices = @transform_3, window_bounds = array<i64: 1, 96>}, {pipeline_mode = #tpu.pipeline_mode<synchronous>, transform_indices = @transform_4, window_bounds = array<i64: 2, 32>}, {pipeline_mode = #tpu.pipeline_mode<synchronous>, transform_indices = @transform_5, window_bounds = array<i64: 1, 32>}, {pipeline_mode = #tpu.pipeline_mode<synchronous>, transform_indices = @transform_6, window_bounds = array<i64: 32, 64>}, {pipeline_mode = #tpu.pipeline_mode<synchronous>, transform_indices = @transform_7, window_bounds = array<i64: 32, 32>}, {pipeline_mode = #tpu.pipeline_mode<synchronous>, transform_indices = @transform_8, window_bounds = array<i64: 1, 32>}, {pipeline_mode = #tpu.pipeline_mode<synchronous>, transform_indices = @transform_9, window_bounds = array<i64: 32, 64>}, {pipeline_mode = #tpu.pipeline_mode<synchronous>, transform_indices = @transform_10, window_bounds = array<i64: 32, 128>}, {pipeline_mode = #tpu.pipeline_mode<synchronous>, transform_indices = @transform_11, window_bounds = array<i64: 1, 128>}, {transform_indices = @transform_12, window_bounds = array<i64: 1, 16, 128>}]} {
    %c0 = arith.constant 0 : index
    %c0_0 = arith.constant 0 : index
    %c0_1 = arith.constant 0 : index
    %0 = vector.load %arg1[%c0, %c0_0, %c0_1] : memref<1x16x6xbf16, #tpu.memory_space<vmem>>, vector<1x16x6xbf16>
    %1 = vector.shape_cast %0 : vector<1x16x6xbf16> to vector<16x6xbf16>
    %c0_2 = arith.constant 0 : index
    %c0_3 = arith.constant 0 : index
    %c0_4 = arith.constant 0 : index
    %2 = vector.load %arg2[%c0_2, %c0_3, %c0_4] : memref<1x8x2xbf16, #tpu.memory_space<vmem>>, vector<1x8x2xbf16>
    %3 = vector.shape_cast %2 : vector<1x8x2xbf16> to vector<8x2xbf16>
    %c0_5 = arith.constant 0 : index
    %c0_6 = arith.constant 0 : index
    %4 = vector.load %arg3[%c0_5, %c0_6] : memref<6x96xbf16, #tpu.memory_space<vmem>>, vector<6x96xbf16>
    %cst = arith.constant dense<0.000000e+00> : vector<16x96xf32>
    %5 = tpu.matmul %1, %4, %cst {dimension_numbers = #tpu.dot_dimension_numbers<[1], [0], [0], [1], [0, 0, 1, 1], [], []>} : vector<16x6xbf16>, vector<6x96xbf16>, vector<16x96xf32> -> vector<16x96xf32>
    %c0_7 = arith.constant 0 : index
    %c0_8 = arith.constant 0 : index
    %6 = vector.load %arg4[%c0_7, %c0_8] : memref<1x96xf32, #tpu.memory_space<vmem>>, vector<1x96xf32>
    %7 = vector.broadcast %6 : vector<1x96xf32> to vector<16x96xf32>
    %8 = arith.addf %5, %7 : vector<16x96xf32>
    %9 = vector.extract_strided_slice %8 {offsets = [0, 0], sizes = [16, 32], strides = [1, 1]} : vector<16x96xf32> to vector<16x32xf32>
    %10 = vector.extract_strided_slice %8 {offsets = [0, 32], sizes = [16, 32], strides = [1, 1]} : vector<16x96xf32> to vector<16x32xf32>
    %11 = vector.extract_strided_slice %8 {offsets = [0, 64], sizes = [16, 32], strides = [1, 1]} : vector<16x96xf32> to vector<16x32xf32>
    %cst_9 = arith.constant 0.176776692 : f32
    %12 = vector.broadcast %cst_9 : f32 to vector<16x32xf32>
    %13 = arith.mulf %11, %12 : vector<16x32xf32>
    %c0_10 = arith.constant 0 : index
    %c0_11 = arith.constant 0 : index
    %14 = vector.load %arg5[%c0_10, %c0_11] : memref<2x32xbf16, #tpu.memory_space<vmem>>, vector<2x32xbf16>
    %cst_12 = arith.constant dense<0.000000e+00> : vector<8x32xf32>
    %15 = tpu.matmul %3, %14, %cst_12 {dimension_numbers = #tpu.dot_dimension_numbers<[1], [0], [0], [1], [0, 0, 1, 1], [], []>} : vector<8x2xbf16>, vector<2x32xbf16>, vector<8x32xf32> -> vector<8x32xf32>
    %c0_13 = arith.constant 0 : index
    %c0_14 = arith.constant 0 : index
    %16 = vector.load %arg6[%c0_13, %c0_14] : memref<1x32xf32, #tpu.memory_space<vmem>>, vector<1x32xf32>
    %17 = vector.broadcast %16 : vector<1x32xf32> to vector<8x32xf32>
    %18 = arith.addf %15, %17 : vector<8x32xf32>
    %cst_15 = arith.constant 0.176776692 : f32
    %19 = vector.broadcast %cst_15 : f32 to vector<8x32xf32>
    %20 = arith.mulf %18, %19 : vector<8x32xf32>
    %21 = arith.truncf %9 : vector<16x32xf32> to vector<16x32xbf16>
    %c0_16 = arith.constant 0 : index
    %c0_17 = arith.constant 0 : index
    %22 = vector.load %arg7[%c0_16, %c0_17] : memref<32x64xbf16, #tpu.memory_space<vmem>>, vector<32x64xbf16>
    %cst_18 = arith.constant dense<0.000000e+00> : vector<16x64xf32>
    %23 = tpu.matmul %21, %22, %cst_18 {dimension_numbers = #tpu.dot_dimension_numbers<[1], [0], [0], [1], [0, 0, 1, 1], [], []>} : vector<16x32xbf16>, vector<32x64xbf16>, vector<16x64xf32> -> vector<16x64xf32>
    %24 = vector.extract_strided_slice %23 {offsets = [0, 0], sizes = [16, 32], strides = [1, 1]} : vector<16x64xf32> to vector<16x32xf32>
    %25 = vector.extract_strided_slice %23 {offsets = [0, 32], sizes = [16, 32], strides = [1, 1]} : vector<16x64xf32> to vector<16x32xf32>
    %26 = arith.truncf %20 : vector<8x32xf32> to vector<8x32xbf16>
    %27 = arith.truncf %24 : vector<16x32xf32> to vector<16x32xbf16>
    %cst_19 = arith.constant dense<0.000000e+00> : vector<8x16xf32>
    %28 = tpu.matmul %26, %27, %cst_19 {dimension_numbers = #tpu.dot_dimension_numbers<[1], [1], [0], [0], [0, 0, 1, 0], [], []>} : vector<8x32xbf16>, vector<16x32xbf16>, vector<8x16xf32> -> vector<8x16xf32>
    %cst_20 = arith.constant dense<0xFF800000> : vector<8xf32>
    %29 = vector.multi_reduction <maximumf>, %28, %cst_20 [1] : vector<8x16xf32> to vector<8xf32>
    %30 = vector.shape_cast %29 : vector<8xf32> to vector<8x1xf32>
    %31 = vector.broadcast %30 : vector<8x1xf32> to vector<8x16xf32>
    %32 = arith.subf %28, %31 : vector<8x16xf32>
    %33 = math.exp %32 : vector<8x16xf32>
    %cst_21 = arith.constant dense<0.000000e+00> : vector<8xf32>
    %34 = vector.multi_reduction <add>, %33, %cst_21 [1] : vector<8x16xf32> to vector<8xf32>
    %35 = vector.shape_cast %34 : vector<8xf32> to vector<8x1xf32>
    %36 = tpu.reciprocal %35 {approx = true} : vector<8x1xf32> -> vector<8x1xf32>
    %37 = vector.broadcast %36 : vector<8x1xf32> to vector<8x16xf32>
    %38 = arith.mulf %33, %37 : vector<8x16xf32>
    %39 = arith.truncf %38 : vector<8x16xf32> to vector<8x16xbf16>
    %40 = arith.truncf %25 : vector<16x32xf32> to vector<16x32xbf16>
    %cst_22 = arith.constant dense<0.000000e+00> : vector<8x32xf32>
    %41 = tpu.matmul %39, %40, %cst_22 {dimension_numbers = #tpu.dot_dimension_numbers<[1], [0], [0], [1], [0, 0, 1, 1], [], []>} : vector<8x16xbf16>, vector<16x32xbf16>, vector<8x32xf32> -> vector<8x32xf32>
    %42 = arith.truncf %41 : vector<8x32xf32> to vector<8x32xbf16>
    %c0_23 = arith.constant 0 : index
    %c0_24 = arith.constant 0 : index
    %43 = vector.load %arg8[%c0_23, %c0_24] : memref<32x32xbf16, #tpu.memory_space<vmem>>, vector<32x32xbf16>
    %cst_25 = arith.constant dense<0.000000e+00> : vector<8x32xf32>
    %44 = tpu.matmul %42, %43, %cst_25 {dimension_numbers = #tpu.dot_dimension_numbers<[1], [0], [0], [1], [0, 0, 1, 1], [], []>} : vector<8x32xbf16>, vector<32x32xbf16>, vector<8x32xf32> -> vector<8x32xf32>
    %c0_26 = arith.constant 0 : index
    %c0_27 = arith.constant 0 : index
    %45 = vector.load %arg9[%c0_26, %c0_27] : memref<1x32xf32, #tpu.memory_space<vmem>>, vector<1x32xf32>
    %46 = vector.broadcast %45 : vector<1x32xf32> to vector<8x32xf32>
    %47 = arith.addf %44, %46 : vector<8x32xf32>
    %48 = math.tanh %47 : vector<8x32xf32>
    %49 = arith.truncf %48 : vector<8x32xf32> to vector<8x32xbf16>
    %c0_28 = arith.constant 0 : index
    %c0_29 = arith.constant 0 : index
    %50 = vector.load %arg10[%c0_28, %c0_29] : memref<32x64xbf16, #tpu.memory_space<vmem>>, vector<32x64xbf16>
    %cst_30 = arith.constant dense<0.000000e+00> : vector<8x64xf32>
    %51 = tpu.matmul %49, %50, %cst_30 {dimension_numbers = #tpu.dot_dimension_numbers<[1], [0], [0], [1], [0, 0, 1, 1], [], []>} : vector<8x32xbf16>, vector<32x64xbf16>, vector<8x64xf32> -> vector<8x64xf32>
    %52 = vector.extract_strided_slice %51 {offsets = [0, 0], sizes = [8, 32], strides = [1, 1]} : vector<8x64xf32> to vector<8x32xf32>
    %53 = vector.extract_strided_slice %51 {offsets = [0, 32], sizes = [8, 32], strides = [1, 1]} : vector<8x64xf32> to vector<8x32xf32>
    %54 = arith.truncf %13 : vector<16x32xf32> to vector<16x32xbf16>
    %55 = arith.truncf %52 : vector<8x32xf32> to vector<8x32xbf16>
    %cst_31 = arith.constant dense<0.000000e+00> : vector<16x8xf32>
    %56 = tpu.matmul %54, %55, %cst_31 {dimension_numbers = #tpu.dot_dimension_numbers<[1], [1], [0], [0], [0, 0, 1, 0], [], []>} : vector<16x32xbf16>, vector<8x32xbf16>, vector<16x8xf32> -> vector<16x8xf32>
    %cst_32 = arith.constant dense<0xFF800000> : vector<16xf32>
    %57 = vector.multi_reduction <maximumf>, %56, %cst_32 [1] : vector<16x8xf32> to vector<16xf32>
    %58 = vector.shape_cast %57 : vector<16xf32> to vector<16x1xf32>
    %59 = vector.broadcast %58 : vector<16x1xf32> to vector<16x8xf32>
    %60 = arith.subf %56, %59 : vector<16x8xf32>
    %61 = math.exp %60 : vector<16x8xf32>
    %cst_33 = arith.constant dense<0.000000e+00> : vector<16xf32>
    %62 = vector.multi_reduction <add>, %61, %cst_33 [1] : vector<16x8xf32> to vector<16xf32>
    %63 = vector.shape_cast %62 : vector<16xf32> to vector<16x1xf32>
    %64 = tpu.reciprocal %63 {approx = true} : vector<16x1xf32> -> vector<16x1xf32>
    %65 = vector.broadcast %64 : vector<16x1xf32> to vector<16x8xf32>
    %66 = arith.mulf %61, %65 : vector<16x8xf32>
    %67 = arith.truncf %66 : vector<16x8xf32> to vector<16x8xbf16>
    %68 = arith.truncf %53 : vector<8x32xf32> to vector<8x32xbf16>
    %cst_34 = arith.constant dense<0.000000e+00> : vector<16x32xf32>
    %69 = tpu.matmul %67, %68, %cst_34 {dimension_numbers = #tpu.dot_dimension_numbers<[1], [0], [0], [1], [0, 0, 1, 1], [], []>} : vector<16x8xbf16>, vector<8x32xbf16>, vector<16x32xf32> -> vector<16x32xf32>
    %70 = arith.addf %69, %10 : vector<16x32xf32>
    %71 = arith.truncf %70 : vector<16x32xf32> to vector<16x32xbf16>
    %c0_35 = arith.constant 0 : index
    %c0_36 = arith.constant 0 : index
    %72 = vector.load %arg11[%c0_35, %c0_36] : memref<32x128xbf16, #tpu.memory_space<vmem>>, vector<32x128xbf16>
    %cst_37 = arith.constant dense<0.000000e+00> : vector<16x128xf32>
    %73 = tpu.matmul %71, %72, %cst_37 {dimension_numbers = #tpu.dot_dimension_numbers<[1], [0], [0], [1], [0, 0, 1, 1], [], []>} : vector<16x32xbf16>, vector<32x128xbf16>, vector<16x128xf32> -> vector<16x128xf32>
    %c0_38 = arith.constant 0 : index
    %c0_39 = arith.constant 0 : index
    %74 = vector.load %arg12[%c0_38, %c0_39] : memref<1x128xf32, #tpu.memory_space<vmem>>, vector<1x128xf32>
    %75 = vector.broadcast %74 : vector<1x128xf32> to vector<16x128xf32>
    %76 = arith.addf %73, %75 : vector<16x128xf32>
    %c0_40 = arith.constant 0 : index
    %c0_41 = arith.constant 0 : index
    %c0_42 = arith.constant 0 : index
    %77 = vector.load %arg13[%c0_40, %c0_41, %c0_42] : memref<1x16x128xf32, #tpu.memory_space<vmem>>, vector<1x16x128xf32>
    %78 = vector.shape_cast %77 : vector<1x16x128xf32> to vector<16x128xf32>
    %79 = vector.shape_cast %76 : vector<16x128xf32> to vector<1x16x128xf32>
    tpu.vector_store %arg13[%c0_40, %c0_41, %c0_42], %79 {strides = array<i32>} : memref<1x16x128xf32, #tpu.memory_space<vmem>>, vector<1x16x128xf32>,
    return
  }
  func.func @transform_0(%arg0: i32) -> (i32, i32, i32) {
    %c0_i32 = arith.constant 0 : i32
    %c0_i32_0 = arith.constant 0 : i32
    %c0_i32_1 = arith.constant 0 : i32
    return %arg0, %c0_i32, %c0_i32_0 : i32, i32, i32
  }
  func.func @transform_1(%arg0: i32) -> (i32, i32, i32) {
    %c0_i32 = arith.constant 0 : i32
    %c0_i32_0 = arith.constant 0 : i32
    %c0_i32_1 = arith.constant 0 : i32
    return %arg0, %c0_i32, %c0_i32_0 : i32, i32, i32
  }
  func.func @transform_2(%arg0: i32) -> (i32, i32) {
    %c0_i32 = arith.constant 0 : i32
    %c0_i32_0 = arith.constant 0 : i32
    %c0_i32_1 = arith.constant 0 : i32
    return %c0_i32, %c0_i32_0 : i32, i32
  }
  func.func @transform_3(%arg0: i32) -> (i32, i32) {
    %c0_i32 = arith.constant 0 : i32
    %c0_i32_0 = arith.constant 0 : i32
    %c0_i32_1 = arith.constant 0 : i32
    return %c0_i32, %c0_i32_0 : i32, i32
  }
  func.func @transform_4(%arg0: i32) -> (i32, i32) {
    %c0_i32 = arith.constant 0 : i32
    %c0_i32_0 = arith.constant 0 : i32
    %c0_i32_1 = arith.constant 0 : i32
    return %c0_i32, %c0_i32_0 : i32, i32
  }
  func.func @transform_5(%arg0: i32) -> (i32, i32) {
    %c0_i32 = arith.constant 0 : i32
    %c0_i32_0 = arith.constant 0 : i32
    %c0_i32_1 = arith.constant 0 : i32
    return %c0_i32, %c0_i32_0 : i32, i32
  }
  func.func @transform_6(%arg0: i32) -> (i32, i32) {
    %c0_i32 = arith.constant 0 : i32
    %c0_i32_0 = arith.constant 0 : i32
    %c0_i32_1 = arith.constant 0 : i32
    return %c0_i32, %c0_i32_0 : i32, i32
  }
  func.func @transform_7(%arg0: i32) -> (i32, i32) {
    %c0_i32 = arith.constant 0 : i32
    %c0_i32_0 = arith.constant 0 : i32
    %c0_i32_1 = arith.constant 0 : i32
    return %c0_i32, %c0_i32_0 : i32, i32
  }
  func.func @transform_8(%arg0: i32) -> (i32, i32) {
    %c0_i32 = arith.constant 0 : i32
    %c0_i32_0 = arith.constant 0 : i32
    %c0_i32_1 = arith.constant 0 : i32
    return %c0_i32, %c0_i32_0 : i32, i32
  }
  func.func @transform_9(%arg0: i32) -> (i32, i32) {
    %c0_i32 = arith.constant 0 : i32
    %c0_i32_0 = arith.constant 0 : i32
    %c0_i32_1 = arith.constant 0 : i32
    return %c0_i32, %c0_i32_0 : i32, i32
  }
  func.func @transform_10(%arg0: i32) -> (i32, i32) {
    %c0_i32 = arith.constant 0 : i32
    %c0_i32_0 = arith.constant 0 : i32
    %c0_i32_1 = arith.constant 0 : i32
    return %c0_i32, %c0_i32_0 : i32, i32
  }
  func.func @transform_11(%arg0: i32) -> (i32, i32) {
    %c0_i32 = arith.constant 0 : i32
    %c0_i32_0 = arith.constant 0 : i32
    %c0_i32_1 = arith.constant 0 : i32
    return %c0_i32, %c0_i32_0 : i32, i32
  }
  func.func @transform_12(%arg0: i32) -> (i32, i32, i32) {
    %c0_i32 = arith.constant 0 : i32
    %c0_i32_0 = arith.constant 0 : i32
    %c0_i32_1 = arith.constant 0 : i32
    return %arg0, %c0_i32, %c0_i32_0 : i32, i32, i32
  }
}

</mosaic_0001>

<bundles_post_ra>
// kernel: tpu_custom_call.1
= control target key start
LH: loop header
LB: loop body
LE: loop exit
PB: predicated region body
PF: predicated region fallthrough
CT: control target
= control target key end

     0   :  { %s1532_s0 = inlined_call_operand.vmem [shape: bf16[2,16,6], index: 0, kind: input, shape index: {}]   ;;  %s1533_s1 = inlined_call_operand.vmem [shape: bf16[2,8,2], index: 1, kind: input, shape index: {}]   ;;  %s1534_s2 = inlined_call_operand.vmem [shape: bf16[6,96], index: 2, kind: input, shape index: {}]   ;;  %s1535_s3 = inlined_call_operand.vmem [shape: f32[1,96], index: 3, kind: input, shape index: {}]   ;;  %s1536_s4 = inlined_call_operand.vmem [shape: bf16[2,32], index: 4, kind: input, shape index: {}]   ;;  %s1537_s5 = inlined_call_operand.vmem [shape: f32[1,32], index: 5, kind: input, shape index: {}]   ;;  %s1538_s6 = inlined_call_operand.vmem [shape: bf16[32,64], index: 6, kind: input, shape index: {}]   ;;  %s1539_s7 = inlined_call_operand.hbm [shape: bf16[32,32], index: 7, kind: input, shape index: {}]   ;;  %s1540_s8 = inlined_call_operand.vmem [shape: f32[1,32], index: 8, kind: input, shape index: {}]   ;;  %s1541_s9 = inlined_call_operand.hbm [shape: bf16[32,64], index: 9, kind: input, shape index: {}]   ;;  %s1542_s10 = inlined_call_operand.hbm [shape: bf16[32,128], index: 10, kind: input, shape index: {}]   ;;  %s1543_s11 = inlined_call_operand.vmem [shape: f32[1,128], index: 11, kind: input, shape index: {}]   ;;  %s1544_s12 = inlined_call_operand.hbm [shape: f32[2,16,128], index: 12, kind: output, shape index: {}]  }
   0x1   :  { %1549 = sst [smem:[#allocation16_spill]] %s1539_s7 }
   0x2   :  { %1550 = sst [smem:[#allocation17_spill]] %s1541_s9 }
   0x3   :  { %17 = vsyncpa [#allocation3], 0 }
   0x4   :  { %18 = vsyncpa [#allocation6], 0 }
   0x5   :  { %19 = vsyncpa [#allocation4], 0 }
   0x6   :  { %21 = vsyncpa [#allocation4 + $0x1], 0  ;;  %s1352_s21 = smov 0   ;;  %s1354_s22 = smov 0  }
   0x7   :  { %s1356_s23 = smov 0   ;;  %s1358_s24 = smov 0  }
   0x8 LB: > { %1551 = sst [smem:[#allocation12_spill]] %s1272_s23  ;;  %s1373_s25 = sadd.s32 4294967295, %s1276_s24   ;;  %s1276_s24 = sphi %s1358_s24, %s1562_s24   ;;  %s1272_s23 = sphi %s1356_s23, %s1564_s23   ;;  %s1268_s22 = sphi %s1354_s22, %s1566_s22   ;;  %s1264_s21 = sphi %s1352_s21, %s1565_s21  }
   0x9   : > { %s946_s26 = sadd.s32 4294967294, %s1276_s24   ;;  %s1377_s27 = sadd.s32 1, %s1276_s24  }
   0xa   : > { %1552 = sst [smem:[#allocation13_spill]] %s1377_s27  ;;  %s296_s28 = sadd.s32 1, %s1272_s23 }
   0xb   : > { %s293_s29 = ssub.s32 %s1276_s24, %s1377_s27  ;;  %p306_p0 = scmp.ne.s32.totalorder %s1272_s23, %s1268_s22 }
   0xc   : > { %p294_p1 = scmp.eq.s32.totalorder %s293_s29, 0  ;;  %p307_p2 = scmp.eq.s32.totalorder %s1373_s25, 1 }
   0xd   : > { %p312_p3 = scmp.ne.s32.totalorder %s1268_s22, %s1264_s21  ;;  %p313_p4 = scmp.eq.s32.totalorder %s946_s26, 1 }
   0xe   : > { %s1388_s30 = scalar_select %p294_p1, %s1272_s23, %s296_s28  }
   0xf   : > { %p1390_p5 = por %p307_p2, %p306_p0  ;;  %p1394_p6 = por %p313_p4, %p312_p3 }
  0x10   : > { %1553 = sst [smem:[#allocation14_spill]] %s1388_s30  ;;  %p947_p7 = scmp.ge.s32.totalorder %s1276_s24, 1 }
  0x11   : > { %s1555_s14 = scalar_select %p1394_p6, 1, 0 }
  0x12   : > { %p320_p8 = scmp.lt.s32.totalorder %s1276_s24, 3  ;;  %p1050_p9 = scmp.eq.s32.totalorder %s1373_s25, 0 }
  0x13   : > { %1556 = sst [smem:[#allocation15_spill]] %s1555_s14  ;;  %s1278_s29 = smov [#allocation5]  }
  0x14   : > { %p1401_p10 = pnand %p947_p7, %p320_p8  ;;  %s1558_s9 = sld [smem:[#allocation17_spill]] }
  0x15   : > { %s1559_s7 = sld [smem:[#allocation16_spill]]  ;;  %s365_s30 = sshll.u32 %s1278_s29, 4  ;;  %s366_s30 = int_to_ptr.vmem [resolvable:$true] %s365_s30 }
  0x16   : > { %p1036_p11 = pneg %p1401_p10  ;;  %s1279_s16 = smov 64  }
  0x17   : > { %s1280_s17 = smov 4   ;;  %s1282_s27 = smov [#allocation7]  }
  0x18   : > { %p1415_p12 = pnand %p1050_p9, %p1036_p11  ;;  %s379_s14 = sshll.u32 %s1282_s27, 4  ;;  %s380_s14 = int_to_ptr.vmem [resolvable:$true] %s379_s14 }
  0x1a   : > { %s363_s18 = sshll.u32 %s1558_s9, 4  ;;  %s1281_s9 = smov [#allocation2]   ;;  %s364_s18 = int_to_ptr.hbm [resolvable:$true] %s363_s18 }
  0x1b   : > { %s346_s26 = sshll.u32 %s1559_s7, 4  ;;  %s348_s23 = sshll.u32 %s1281_s9, 4  ;;  %s347_s26 = int_to_ptr.hbm [resolvable:$true] %s346_s26  ;;  %s349_s23 = int_to_ptr.vmem [resolvable:$true] %s348_s23 }
  0x1c   : > { %1042 = dma.hbm_to_vmem [thread:$0]  (!%p1415_p12), %s364_s18, 256, %s366_s30, [#allocation6], %s1279_s16, %s1279_s16, %s1280_s17  }
  0x1d   : > { %s377_s7 = sshll.u32 %s1542_s10, 4  ;;  %413 = sbr.rel (%p1401_p10) target bundleno = 1801 (0x709), region = 68  ;;  %s378_s7 = int_to_ptr.hbm [resolvable:$true] %s377_s7 }
  0x1e   : > { %1039 = dma.hbm_to_vmem [thread:$0]  (!%p1415_p12), %s347_s26, 256, %s349_s23, [#allocation3], %s1279_s16, %s1279_s16, %s1280_s17  }
  0x1f   : > { %1045 = dma.hbm_to_vmem [thread:$0]  (!%p1415_p12), %s378_s7, 256, %s380_s14, [#allocation6], %s1279_s16, %s1279_s16, %s1280_s17  }
  0x22   : > { %1251 = dma.done.wait (%p1050_p9), [#allocation3], 256  }
  0x23   : > { %1253 = vsyncadd (%p1050_p9), [#allocation3], 4294967040 }
  0x24   : > { %1255 = dma.done.wait (%p1050_p9), [#allocation6], 512  }
  0x25   : > { %1257 = vsyncadd (%p1050_p9), [#allocation6], 4294966784  ;;  %p470_p13 = scmp.lt.s32.totalorder %s1373_s25, 1  ;;  %vm497_vm0 = vcmask 1042432   ;;  %v483_v0 = vld [vmem:[%s1534_s2] sm:$0x7] }
  0x26   : > { %v499_v1 = vsel %vm497_vm0, %v483_v0, 0  ;;  %vm493_vm1 = vcmask 48128   ;;  %v1014_v3 = vld [vmem:[%s1538_s6 + $0x8] sm:$0xff]  ;;  %v1013_v4 = vld [vmem:[%s1538_s6] sm:$0xff]  ;;  %vm526_vm2 = vcmask 1040384   ;;  %vm522_vm3 = vcmask 15360  }
  0x27   : > { %s471_s9 = scalar_select %p470_p13, %s1373_s25, 1  ;;  %508 = vmatpush.bf16.msra.mxu0 %v499_v1  ;;  %571 = vmatpush.bf16.msra.mxu2 %v1014_v3  ;;  %v517_v5 = vld [vmem:[%s1536_s4] sm:$0x1]  ;;  %vm561_vm4 = vcmask 261120   ;;  %vm600_vm5 = vcmask 130048   ;;  %v1016_v36 = vld [vmem:[#allocation2 + $0x8] sm:$0xff] }
  0x28   : > { %v528_v6 = vsel %vm526_vm2, %v517_v5, 0  ;;  %v1098_v9 = vld [vmem:[%s1535_s3] ss:$0 sm:$0xff]  ;;  %s1283_s15 = smov 96   ;;  %s1284_s18 = smov 64   ;;  %v1018_v45 = vld [vmem:[#allocation5 + $0x8] sm:$0xff] }
  0x29   : > { %s1011_s7 = sshll.u32 %s471_s9, 3  ;;  %s959_s16 = sshll.u32 %s471_s9, 2  ;;  %537 = vmatpush.bf16.msra.mxu1 %v528_v6  ;;  %v1099_v17 = vld [vmem:[%s1537_s5] ss:$0 sm:$0xff]  ;;  %v1017_v46 = vld [vmem:[#allocation5] sm:$0xff]  ;;  %vm729_vm6 = vcmask 64512  }
  0x2a   : > { %s474_s30 = scalar_lea.vmem %s1532_s0, %s1011_s7  ;;  %s478_s20 = scalar_lea.vmem %s1533_s1, %s959_s16  ;;  %v1015_v41 = vld [vmem:[#allocation2] sm:$0xff]  ;;  %vm767_vm7 = vcmask 1043456  }
  0x2b   : > { %v1012_v2 = vld [vmem:[%s474_s30] sm:$0xff]  ;;  %572 = vmatpush.bf16.msra.mxu2 %v1013_v4  ;;  %s467_s29 = sand.u32 1, %s1268_s22  }
  0x2c   : > { %964 = vmatmul.msk.bf16.vlgmr.msra.gmra.mxu0 %vm493_vm1, %v1012_v2  ;;  %v482_v7 = vld [vmem:[%s478_s20] sm:$0xf]  ;;  %s956_s16 = sshll.u32 %s467_s29, 4  ;;  %s1021_s20 = sshll.u32 %s1373_s25, 4 }
  0x2d   : > { %965 = vmatmul.msk.bf16.vlgmr.msra.gmra.mxu1 %vm522_vm3, %v482_v7  ;;  %v1100_v47 = vld [vmem:[%s1540_s8] ss:$0 sm:$0xff]  ;;  %s837_s27 = scalar_lea.hbm %s1544_s12, %s1021_s20  ;;  %s469_s30 = scalar_lea.vmem [#allocation8], %s956_s16 }
  0x2e   : > { %663 = vmatpush.bf16.msrb.mxu1 %v1016_v36  ;;  %s838_s9 = sshll.u32 %s469_s30, 4  ;;  %s840_s14 = sshll.u32 %s837_s27, 4  ;;  %s839_s9 = int_to_ptr.vmem [resolvable:$true] %s838_s9  ;;  %s841_s14 = int_to_ptr.hbm [resolvable:$true] %s840_s14 }
  0x2f   : > { %697 = vmatpush.bf16.msrb.mxu2 %v1018_v45  ;;  %s1226_s16 = scalar_lea.hbm %s1544_s12, 32 }
  0x32   : > { %664 = vmatpush.bf16.msrb.mxu1 %v1015_v41 }
  0x33   : > { %698 = vmatpush.bf16.msrb.mxu2 %v1017_v46 }
  0xa9   : > { %v510_v8 = vpop.f32.mrf.mxu0 }
  0xaa   : > { %v1461_v11 = vadd.f32 %v1098_v9, %v510_v8  ;;  %v539_v14 = vpop.f32.mrf.mxu1 }
  0xab   : > { %v540_v18 = vadd.f32 %v1099_v17, %v539_v14 }
  0xac   : > { %v515_v24 = vmul.f32 0.17677669, %v1461_v11 }
  0xad   : > { %v543_v21 = vmul.f32 0.17677669, %v540_v18  ;;  %v1020_v18 = vld [vmem:[#allocation7 + $0x8] sm:$0xff] }
  0xae   : > { %815 = vmatpush.bf16.msra.mxu1 %v1020_v18 }
  0xaf   : > { %v579_v25 = vpack.c.bf16 %v543_v21, %v543_v21 }
  0xb1   : > { %v512_v10 = vpop.f32.mrf.mxu0 }
  0xb2   : > { %v1463_v12 = vadd.f32 %v1098_v9, %v512_v10  ;;  %v541_v15 = vpop.f32.mrf.mxu1 }
  0xb4   : > { %v544_v13 = vpack.c.bf16 %v1463_v12, %v1461_v11  ;;  %v516_v23 = vmul.f32 0.17677669, %v1463_v12 }
  0xb6   : > { %974 = vmatmul.msk.bf16.vlgmr.msra.gmra.mxu2 %vm561_vm4, %v544_v13  ;;  %v704_v26 = vpack.c.bf16 %v516_v23, %v515_v24 }
 0x139   : > { %v574_v16 = vpop.f32.mrf.mxu2 }
 0x141   : > { %v576_v19 = vpop.f32.mrf.mxu2 }
 0x142   : > { %v580_v20 = vpack.c.bf16 %v576_v19, %v574_v16  ;;  %v1019_v19 = vld [vmem:[#allocation7] sm:$0xff] }
 0x143   : > { %816 = vmatpush.bf16.msra.mxu1 %v1019_v19 }
 0x144   : > { %614 = vrot.lane.b32.xlu1 %v580_v20, %s1283_s15  ;;  %v585_v22 = vsel %vm561_vm4, %v580_v20, 0 }
 0x145   : > { %594 = vmatpush.bf16.xpose.msra.mxu3 %v585_v22 }
 0x14c   : > { %975 = vmatmul.msk.bf16.vlgmr.msra.gmra.mxu3 %vm561_vm4, %v579_v25  ;;  %707 = vrot.lane.b32.xlu1 %v704_v26, %s1284_s18  ;;  %v1101_v26 = vld [vmem:[%s1543_s11] ss:$0 sm:$0xff]  ;;  %s1220_s18 = sshra.s32 %s841_s14, 4  ;;  %s1221_s18 = int_to_ptr.hbm [resolvable:$true] %s1220_s18 }
 0x14d   : > { %s1222_s25 = scalar_lea.hbm %s1221_s18, 16  ;;  %p1227_p3 = scmp.lt.s32.totalorder %s1221_s18, %s1544_s12 }
 0x14e   : > { %p1223_p0 = scmp.ne.s32.totalorder %s1221_s18, %s1222_s25  ;;  %p1228_p4 = scmp.lt.s32.totalorder %s1226_s16, %s1222_s25 }
 0x150   : > { %p1224_p1 = pnand %p1223_p0, %p1390_p5  ;;  %p1229_p7 = por %p1228_p4, %p1227_p3 }
 0x152   : > { %p1225_p2 = pneg %p1224_p1 }
 0x154   : > { %p1230_p8 = pnand %p1229_p7, %p1225_p2 }
 0x1b6   : > { %v615_v27 = vpop.permute.xlu1 %614 }
 0x1b7   : > { %627 = vmatpush.bf16.msrb.mxu0 %v615_v27 }
 0x1be   : > { %v708_v57 = vpop.permute.xlu1 %707 }
 0x1cf   : > { %v596_v28 = vpop.f32.mrf.mxu3 }
 0x1d0   : > { %v601_v29 = vsel %vm600_vm5, %v596_v28, -inf }
 0x1d1   : > { %602 = vmax.xlane.f32.xlu0 %v601_v29 }
 0x1d7   : > { %v598_v30 = vpop.f32.mrf.mxu3 }
 0x244   : > { %v603_v31 = vpop.xlane.xlu0 %602 }
 0x245   : > { %v604_v32 = vsub.f32 %v596_v28, %v603_v31 }
 0x247   : > { %v605_v33 = vmul.f32 1.442695, %v604_v32 }
 0x249   : > { %1102 = vpow2.f32 %v605_v33 }
 0x24f   : > { %v1103_v34 = vpop.eup %1102 }
 0x250   : > { %v607_v35 = vsel %vm600_vm5, %v1103_v34, 0.0 }
 0x251   : > { %608 = vadd.xlane.f32.xlu0 %v607_v35 }
 0x2c4   : > { %v609_v37 = vpop.xlane.xlu0 %608 }
 0x2c5   : > { %1104 = vrcp.f32 %v609_v37 }
 0x2cb   : > { %v1105_v38 = vpop.eup %1104 }
 0x2cc   : > { %v611_v39 = vmul.f32 %v1105_v38, %v1103_v34 }
 0x2ce   : > { %v612_v40 = vpack.c.bf16 %v611_v39, %v611_v39 }
 0x2d0   : > { %976 = vmatmul.msk.bf16.vlgmr.msrb.gmra.mxu0 %vm600_vm5, %v612_v40 }
 0x34d   : > { %v629_v42 = vpop.f32.mrf.mxu0 }
 0x34e   : > { %v633_v43 = vpack.c.bf16 %v629_v42, %v629_v42 }
 0x350   : > { %985 = vmatmul.msk.bf16.vlgmr.msrb.gmra.mxu1 %vm561_vm4, %v633_v43 }
 0x355   : > { %v631_v44 = vpop.f32.mrf.mxu0 }
 0x3cd   : > { %v666_v48 = vpop.f32.mrf.mxu1 }
 0x3ce   : > { %v667_v49 = vadd.f32 %v1100_v47, %v666_v48 }
 0x3d0   : > { %1106 = vtanh.f32 %v667_v49 }
 0x3d5   : > { %v668_v50 = vpop.f32.mrf.mxu1 }
 0x3d6   : > { %v1107_v51 = vpop.eup %1106 }
 0x3d7   : > { %v671_v52 = vpack.c.bf16 %v1107_v51, %v1107_v51 }
 0x3d9   : > { %994 = vmatmul.msk.bf16.vlgmr.msrb.gmra.mxu2 %vm561_vm4, %v671_v52 }
 0x45c   : > { %v700_v53 = vpop.f32.mrf.mxu2 }
 0x45d   : > { %v705_v54 = vpack.c.bf16 %v700_v53, %v700_v53 }
 0x45f   : > { %v713_v55 = vsel %vm561_vm4, %v705_v54, 0 }
 0x460   : > { %722 = vmatpush.bf16.xpose.msrb.mxu3 %v713_v55 }
 0x464   : > { %v702_v56 = vpop.f32.mrf.mxu2 }
 0x467   : > { %995 = vmatmul.msk.bf16.vlgmr.msrb.gmra.mxu3 %vm561_vm4, %v708_v57 }
 0x4ea   : > { %v724_v58 = vpop.f32.mrf.mxu3 }
 0x4eb   : > { %v730_v59 = vsel %vm729_vm6, %v724_v58, -inf }
 0x4ec   : > { %731 = vmax.xlane.f32.xlu2 %v730_v59 }
 0x4f2   : > { %v726_v60 = vpop.f32.mrf.mxu3 }
 0x4f3   : > { %v733_v61 = vsel %vm729_vm6, %v726_v60, -inf }
 0x4f4   : > { %734 = vmax.xlane.f32.xlu2 %v733_v61 }
 0x50c   : > { %754 = vrot.lane.b32.xlu2 %v705_v54, %s1283_s15 }
 0x514   : > { %760 = vrot.lane.b32.xlu2 %v1463_v12, %s1283_s15 }
 0x55f   : > { %v732_v62 = vpop.xlane.xlu2 %731 }
 0x560   : > { %v736_v63 = vsub.f32 %v724_v58, %v732_v62 }
 0x562   : > { %v738_v0 = vmul.f32 1.442695, %v736_v63 }
 0x564   : > { %1108 = vpow2.f32 %v738_v0 }
 0x567   : > { %v735_v1 = vpop.xlane.xlu2 %734 }
 0x568   : > { %v737_v2 = vsub.f32 %v726_v60, %v735_v1 }
 0x56a   : > { %v1109_v3 = vpop.eup %1108  ;;  %v740_v4 = vmul.f32 1.442695, %v737_v2 }
 0x56b   : > { %v742_v5 = vsel %vm729_vm6, %v1109_v3, 0.0 }
 0x56c   : > { %1110 = vpow2.f32 %v740_v4  ;;  %743 = vadd.xlane.f32.xlu0 %v742_v5 }
 0x56f   : > { %v755_v6 = vpop.permute.xlu2 %754 }
 0x570   : > { %v769_v7 = vsel %vm767_vm7, %v755_v6, 0 }
 0x571   : > { %778 = vmatpush.bf16.msra.mxu0 %v769_v7 }
 0x572   : > { %v1111_v8 = vpop.eup %1110 }
 0x573   : > { %v745_v9 = vsel %vm729_vm6, %v1111_v8, 0.0 }
 0x574   : > { %746 = vadd.xlane.f32.xlu1 %v745_v9 }
 0x577   : > { %v761_v21 = vpop.permute.xlu2 %760 }
 0x580   : > { %758 = vrot.lane.b32.xlu0 %v1461_v11, %s1283_s15  ;;  %s826_s15 = scalar_lea.sflag [#allocation4], %s467_s29 }
 0x5df   : > { %v744_v10 = vpop.xlane.xlu0 %743 }
 0x5e0   : > { %1112 = vrcp.f32 %v744_v10 }
 0x5e6   : > { %v1113_v13 = vpop.eup %1112 }
 0x5e7   : > { %v747_v12 = vpop.xlane.xlu1 %746  ;;  %v750_v15 = vmul.f32 %v1113_v13, %v1109_v3 }
 0x5e8   : > { %1114 = vrcp.f32 %v747_v12 }
 0x5ee   : > { %v1115_v14 = vpop.eup %1114 }
 0x5ef   : > { %v751_v16 = vmul.f32 %v1115_v14, %v1111_v8 }
 0x5f1   : > { %v752_v17 = vpack.c.bf16 %v751_v16, %v750_v15 }
 0x5f2   : > { %v759_v11 = vpop.permute.xlu0 %758 }
 0x5f3   : > { %996 = vmatmul.msk.bf16.vlgmr.msra.gmra.mxu0 %vm729_vm6, %v752_v17 }
 0x670   : > { %v780_v20 = vpop.f32.mrf.mxu0 }
 0x671   : > { %v781_v23 = vadd.f32 %v780_v20, %v759_v11 }
 0x678   : > { %v782_v22 = vpop.f32.mrf.mxu0 }
 0x679   : > { %v783_v24 = vadd.f32 %v782_v22, %v761_v21 }
 0x67b   : > { %v785_v25 = vpack.c.bf16 %v783_v24, %v781_v23 }
 0x67d   : > { %1005 = vmatmul.msk.bf16.vlgmr.msra.gmra.mxu1 %vm561_vm4, %v785_v25 }
 0x6fa   : > { %v818_v27 = vpop.f32.mrf.mxu1 }
 0x6fb   : > { %v819_v28 = vadd.f32 %v1101_v26, %v818_v27 }
 0x6fd   : > { %823 = vst [vmem:[%s469_s30] sm:$0xff] %v819_v28 }
 0x702   : > { %v820_v29 = vpop.f32.mrf.mxu1 }
 0x703   : > { %v821_v30 = vadd.f32 %v1101_v26, %v820_v29 }
 0x705   : > { %824 = vst [vmem:[%s469_s30 + $0x8] sm:$0xff] %v821_v30 }
 0x706   : > { %1233 = shalt.err (!%p1230_p8)
}
 0x707   : > { %s1285_s29 = smov 128   ;;  %s1286_s20 = smov 8  }
 0x708   : > { %1034 = dma.vmem_to_hbm [thread:$0]  (%p1390_p5), %s839_s9, 256, %s841_s14, %s826_s15, %s1285_s29, %s1285_s29, %s1286_s20  }
 0x709 PF: > { %p1056_p9 = scmp.ge.s32.totalorder %s1276_s24, 2  ;;  %s855_s23 = sand.u32 1, %s1264_s21  }
 0x70a   : > { %s856_s27 = scalar_lea.sflag [#allocation4], %s855_s23 }
 0x70b   : > { %p1047_p10 = pnand %p1056_p9, %p1394_p6 }
 0x70d   : > { %p1048_p11 = pneg %p1047_p10 }
 0x70f   : > { %1259 = dma.done.wait (%p1048_p11), %s856_s27, 256  }
 0x710   : > { %1261 = vsyncadd (%p1048_p11), %s856_s27, 4294967040  ;;  %s1562_s24 = sld [smem:[#allocation13_spill]]  ;;  %s1565_s21 = smov %s1268_s22 }
 0x711   : > { %s1563_s30 = sld [smem:[#allocation12_spill]] }
 0x712   : > { %s1564_s23 = sld [smem:[#allocation14_spill]] }
 0x716   : > { %p24_p12 = scmp.ge.s32.totalorder %s1562_s24, 4  }
 0x717   : > { %s1566_s22 = smov %s1563_s30 }
 0x718   :  { %26 = sbr.rel (!%p24_p12) target bundleno = 8 (0x8), region = 119 }
 0x71d   :  { %862 = vsyncpa [#allocation3], 1 }
 0x71e   :  { %864 = vsyncpa [#allocation3 + $0x1], 1 }
 0x71f   :  { %865 = vsyncpa [#allocation6], 1 }
 0x720   :  { %866 = vsyncpa [#allocation4], 1 }
 0x721   :  { %868 = vsyncpa [#allocation4 + $0x1], 1 }

</bundles_post_ra>
